<compile_context>
chip_gen: v7x
topology: tpu7x:2x2x1
jax: 0.10.0
libtpu: 0.0.40
codegen_flags: <defaults>
</compile_context>

<pallas_src>
import jax
import jax.numpy as jnp
from jax.experimental import pallas as pl
from jax.experimental.pallas import tpu as pltpu

DTYPE = jnp.bfloat16
_MASK_NEG = -1e9   # additive f32 bias for padded key positions


def _round_up(x, m):
    return (x + m - 1) // m * m


def _pad_axis(x, axis, new_size, value=0.0):
    pad = new_size - x.shape[axis]
    if pad == 0:
        return x
    widths = [(0, 0)] * x.ndim
    widths[axis] = (0, pad)
    return jnp.pad(x, widths, constant_values=value)


def _vmem_limit(need_bytes):
    """Scoped-VMEM budget from actual block bytes, clamped to physical capacity - headroom."""
    try:
        cap = int(pltpu.get_tpu_info().vmem_capacity_bytes)
    except Exception:
        cap = 64 * 1024 * 1024          # conservative default: v7x per-TC VMEM
    hi = max(cap - (16 << 20), 32 << 20)
    return int(min(max(need_bytes + (4 << 20), 32 << 20), hi))


# --------------------------------------------------------------------------------------
# Phase 1: input projections (computed ONCE, per-head weight tiles streamed)
# --------------------------------------------------------------------------------------

def _proj_q_kernel(x_ref, w_ref, y_ref):
    y_ref[...] = jnp.dot(x_ref[...], w_ref[...],
                         preferred_element_type=jnp.float32).astype(y_ref.dtype)


def _proj_kv_kernel(x_ref, wk_ref, wv_ref, k_ref, v_ref):
    x = x_ref[...]                      # one DMA of the activations feeds both projections
    k_ref[...] = jnp.dot(x, wk_ref[...], preferred_element_type=jnp.float32).astype(k_ref.dtype)
    v_ref[...] = jnp.dot(x, wv_ref[...], preferred_element_type=jnp.float32).astype(v_ref.dtype)


def _project_q(x, w, *, tile_rows, s_pad):
    B = x.shape[0]
    nh, hi_pad, hd_pad = w.shape
    x_p = _pad_axis(_pad_axis(x.astype(DTYPE), 1, s_pad), 2, hi_pad)
    grid = (B, nh, s_pad // tile_rows)  # rows innermost -> per-head weight fetched once per head
    need = 2 * (tile_rows * hi_pad * 2 + hi_pad * hd_pad * 2 + tile_rows * hd_pad * 2)
    return pl.pallas_call(
        _proj_q_kernel,
        out_shape=jax.ShapeDtypeStruct((B, nh, s_pad, hd_pad), DTYPE),
        grid_spec=pltpu.PrefetchScalarGridSpec(
            num_scalar_prefetch=0,
            grid=grid,
            in_specs=[
                pl.BlockSpec((None, tile_rows, hi_pad), lambda b, h, s: (b, s, 0)),
                pl.BlockSpec((None, hi_pad, hd_pad), lambda b, h, s: (h, 0, 0)),
            ],
            out_specs=pl.BlockSpec((None, None, tile_rows, hd_pad),
                                   lambda b, h, s: (b, h, s, 0)),
        ),
        compiler_params=pltpu.CompilerParams(
            dimension_semantics=("parallel", "parallel", "parallel"),
            vmem_limit_bytes=_vmem_limit(need)),
    )(x_p, w)


def _project_kv(x, wk, wv, *, tile_rows, s_pad):
    B = x.shape[0]
    nh, hi_pad, hd_pad = wk.shape
    x_p = _pad_axis(_pad_axis(x.astype(DTYPE), 1, s_pad), 2, hi_pad)
    grid = (B, nh, s_pad // tile_rows)
    need = 2 * (tile_rows * hi_pad * 2 + 2 * hi_pad * hd_pad * 2 + 2 * tile_rows * hd_pad * 2)
    out_sd = jax.ShapeDtypeStruct((B, nh, s_pad, hd_pad), DTYPE)
    k_p, v_p = pl.pallas_call(
        _proj_kv_kernel,
        out_shape=(out_sd, out_sd),
        grid_spec=pltpu.PrefetchScalarGridSpec(
            num_scalar_prefetch=0,
            grid=grid,
            in_specs=[
                pl.BlockSpec((None, tile_rows, hi_pad), lambda b, h, s: (b, s, 0)),
                pl.BlockSpec((None, hi_pad, hd_pad), lambda b, h, s: (h, 0, 0)),
                pl.BlockSpec((None, hi_pad, hd_pad), lambda b, h, s: (h, 0, 0)),
            ],
            out_specs=(
                pl.BlockSpec((None, None, tile_rows, hd_pad), lambda b, h, s: (b, h, s, 0)),
                pl.BlockSpec((None, None, tile_rows, hd_pad), lambda b, h, s: (b, h, s, 0)),
            ),
        ),
        compiler_params=pltpu.CompilerParams(
            dimension_semantics=("parallel", "parallel", "parallel"),
            vmem_limit_bytes=_vmem_limit(need)),
    )(x_p, wk, wv)
    return k_p, v_p


# --------------------------------------------------------------------------------------
# Phase 2: flash attention (online softmax over KV blocks) + per-head Wo accumulation
# --------------------------------------------------------------------------------------

def _flash_attn_kernel(q_ref, k_ref, v_ref, mask_ref, wo_ref, out_ref,
                       m_sc, l_sc, acc_sc, oacc_sc):
    """Grid point (b, sq_tile, head, kv_tile). kv is innermost, then head."""
    h = pl.program_id(2)
    kv = pl.program_id(3)
    nh = pl.num_programs(2)
    nkv = pl.num_programs(3)

    @pl.when(kv == 0)
    def _():                                      # new head: reset online-softmax state
        m_sc[...] = jnp.full_like(m_sc, -jnp.inf)
        l_sc[...] = jnp.zeros_like(l_sc)
        acc_sc[...] = jnp.zeros_like(acc_sc)

    @pl.when((kv == 0) & (h == 0))
    def _():                                      # new (b, sq_tile): reset output accumulator
        oacc_sc[...] = jnp.zeros_like(oacc_sc)

    # logits = q @ k^T (softmax scale is pre-folded into Wq); contract head dim directly.
    s = jax.lax.dot_general(q_ref[...], k_ref[...], (((1,), (1,)), ((), ())),
                            preferred_element_type=jnp.float32)     # (tile_sq, tile_kv) f32
    s = s + mask_ref[...]                                           # f32 additive mask

    # online softmax update
    m_prev = m_sc[...]
    m_new = jnp.maximum(m_prev, jnp.max(s, axis=-1, keepdims=True))
    alpha = jnp.exp(m_prev - m_new)
    p = jnp.exp(s - m_new)
    l_sc[...] = alpha * l_sc[...] + jnp.sum(p, axis=-1, keepdims=True)
    acc_sc[...] = alpha * acc_sc[...] + jnp.dot(p.astype(DTYPE), v_ref[...],
                                                preferred_element_type=jnp.float32)
    m_sc[...] = m_new

    # dropout(p=0.0) == identity. Finalize this head and fold its context through this
    # head's Wo rows into the f32 output accumulator (Wo tiled per head, no ctx slab).
    @pl.when(kv == nkv - 1)
    def _():
        ctx = (acc_sc[...] * pl.reciprocal(l_sc[...], approx=True)).astype(DTYPE)
        oacc_sc[...] += jnp.dot(ctx, wo_ref[...], preferred_element_type=jnp.float32)

    @pl.when((kv == nkv - 1) & (h == nh - 1))
    def _():
        out_ref[...] = oacc_sc[...].astype(out_ref.dtype)


# --------------------------------------------------------------------------------------
# One-time parameter prep (hoisted out of the per-call path)
# --------------------------------------------------------------------------------------

def prepare_params(wq, wk, wv, wo, *, num_heads):
    """torch-layout (out_features, in_features) weights -> padded, per-head tiled layouts.
       Softmax scale is folded into Wq (in f32) so the kernel never rescales logits."""
    H_out, H_in = wq.shape
    assert H_out % num_heads == 0
    head_dim = H_out // num_heads
    scale = float(head_dim) ** -0.5
    hd_pad = _round_up(head_dim, 128)
    hi_pad = _round_up(H_in, 128)
    ho_pad = _round_up(H_out, 128)

    def prep_in_proj(w, s=1.0):
        wt = jnp.asarray(w, jnp.float32).T * s            # (H_in, H_out)
        wt = _pad_axis(wt, 0, hi_pad)                     # zero-pad contraction rows
        wt = wt.reshape(hi_pad, num_heads, head_dim)
        wt = _pad_axis(wt, 2, hd_pad)                     # zero-pad per-head output columns
        return jnp.transpose(wt, (1, 0, 2)).astype(DTYPE)  # (nh, hi_pad, hd_pad)

    wo_t = jnp.asarray(wo, jnp.float32).T                 # (nh*hd, H_out)
    wo_t = wo_t.reshape(num_heads, head_dim, H_out)
    wo_t = _pad_axis(wo_t, 1, hd_pad)                     # zero rows for padded head dims
    wo_p = _pad_axis(wo_t, 2, ho_pad).astype(DTYPE)       # (nh, hd_pad, ho_pad)

    return {
        "wq": prep_in_proj(wq, scale), "wk": prep_in_proj(wk), "wv": prep_in_proj(wv),
        "wo": wo_p,
        "num_heads": num_heads, "head_dim": head_dim,
        "hidden_in": H_in, "hidden_out": H_out,
        "hd_pad": hd_pad, "hi_pad": hi_pad, "ho_pad": ho_pad,
    }


def cross_attention_forward(params, query, key_value, mask=None):
    """query: (B, Sq, H), key_value: (B, Skv, H); mask broadcastable to (B, nh, Sq, Skv)."""
    B, Sq, H = query.shape
    _, Skv, Hk = key_value.shape
    assert H == params["hidden_in"] and Hk == params["hidden_in"]
    nh = params["num_heads"]
    hd_pad, ho_pad = params["hd_pad"], params["ho_pad"]

    # ---- tile geometry (lane-dense last dims everywhere) ----
    tile_sq = min(256, _round_up(Sq, 16))       # mult of 16 (bf16 sublanes), 256 fills v6e/v7x MXU
    sq_pad = _round_up(Sq, tile_sq)
    tile_kv = min(512, _round_up(Skv, 128))
    skv_pad = _round_up(Skv, tile_kv)

    # ---- phase 1: projections computed once (never per Sq tile) ----
    q_p = _project_q(query, params["wq"], tile_rows=tile_sq, s_pad=sq_pad)
    k_p, v_p = _project_kv(key_value, params["wk"], params["wv"],
                           tile_rows=tile_kv, s_pad=skv_pad)

    # ---- mask: broadcastable shape, f32, padded keys get a large negative bias ----
    if mask is None:
        m = jnp.zeros((1, 1, 1, Skv), jnp.float32)
    else:
        m = jnp.asarray(mask, jnp.float32)
        m = m.reshape((1,) * (4 - m.ndim) + m.shape)
        if m.shape[-1] == 1:
            m = jnp.broadcast_to(m, m.shape[:-1] + (Skv,))
    assert m.shape[0] in (1, B) and m.shape[1] in (1, nh) \
        and m.shape[2] in (1, Sq) and m.shape[-1] == Skv
    m = _pad_axis(m, 3, skv_pad, value=_MASK_NEG)
    if m.shape[2] != 1:
        m = _pad_axis(m, 2, sq_pad)
    mb, mh, msq, _ = m.shape
    mask_sq_blk = tile_sq if msq != 1 else 1

    def mask_index_map(b, i, h, kv):
        return (b if mb > 1 else 0, h if mh > 1 else 0, i if msq > 1 else 0, kv)

    # ---- phase 2: flash attention + Wo accumulation ----
    grid = (B, sq_pad // tile_sq, nh, skv_pad // tile_kv)

    need = (2 * tile_sq * hd_pad * 2            # q (double buffered, bf16)
            + 2 * 2 * tile_kv * hd_pad * 2      # k, v
            + 2 * mask_sq_blk * tile_kv * 4     # mask (f32)
            + 2 * hd_pad * ho_pad * 2           # per-head Wo tile
            + 2 * tile_sq * ho_pad * 2          # out
            + 2 * tile_sq * 128 * 4             # m, l scratch (physical lane padding)
            + tile_sq * hd_pad * 4              # per-head context accumulator
            + tile_sq * ho_pad * 4)             # f32 output accumulator

    out = pl.pallas_call(
        _flash_attn_kernel,
        out_shape=jax.ShapeDtypeStruct((B, sq_pad, ho_pad), DTYPE),
        grid_spec=pltpu.PrefetchScalarGridSpec(
            num_scalar_prefetch=0,
            grid=grid,
            in_specs=[
                pl.BlockSpec((None, None, tile_sq, hd_pad), lambda b, i, h, kv: (b, h, i, 0)),
                pl.BlockSpec((None, None, tile_kv, hd_pad), lambda b, i, h, kv: (b, h, kv, 0)),
                pl.BlockSpec((None, None, tile_kv, hd_pad), lambda b, i, h, kv: (b, h, kv, 0)),
                pl.BlockSpec((None, None, mask_sq_blk, tile_kv), mask_index_map),
                pl.BlockSpec((None, hd_pad, ho_pad), lambda b, i, h, kv: (h, 0, 0)),
            ],
            out_specs=pl.BlockSpec((None, tile_sq, ho_pad), lambda b, i, h, kv: (b, i, 0)),
            scratch_shapes=[
                pltpu.VMEM((tile_sq, 1), jnp.float32),        # running max
                pltpu.VMEM((tile_sq, 1), jnp.float32),        # running sum
                pltpu.VMEM((tile_sq, hd_pad), jnp.float32),   # per-head context acc
                pltpu.VMEM((tile_sq, ho_pad), jnp.float32),   # output (Wo) accumulator
            ],
        ),
        compiler_params=pltpu.CompilerParams(
            dimension_semantics=("parallel", "parallel", "arbitrary", "arbitrary"),
            vmem_limit_bytes=_vmem_limit(need)),
    )(q_p, k_p, v_p, m, params["wo"])

    return out[:, :Sq, :params["hidden_out"]]


def cross_attention_from_self(query, key_value, wq, wk, wv, wo, mask=None, *, num_heads):
    """Convenience wrapper; prefer prepare_params() once + cross_attention_forward() per call."""
    return cross_attention_forward(
        prepare_params(wq, wk, wv, wo, num_heads=num_heads), query, key_value, mask)


# --------------------------------------------------------------------------------------
# Pure-JAX reference + smoke test
# --------------------------------------------------------------------------------------

def _reference(query, key_value, wq, wk, wv, wo, mask, num_heads):
    B, Sq, H = query.shape
    Skv = key_value.shape[1]
    hd = H // num_heads
    f32 = jnp.float32
    q = query.astype(f32) @ wq.astype(f32).T
    k = key_value.astype(f32) @ wk.astype(f32).T
    v = key_value.astype(f32) @ wv.astype(f32).T
    q = q.reshape(B, Sq, num_heads, hd).transpose(0, 2, 1, 3)
    k = k.reshape(B, Skv, num_heads, hd).transpose(0, 2, 1, 3)
    v = v.reshape(B, Skv, num_heads, hd).transpose(0, 2, 1, 3)
    attn = (q @ jnp.swapaxes(k, -2, -1)) * (hd ** -0.5)
    attn = attn + mask.astype(f32)
    attn = jax.nn.softmax(attn, axis=-1)
    out = attn @ v
    out = out.transpose(0, 2, 1, 3).reshape(B, Sq, H)
    return out @ wo.astype(f32).T


if __name__ == "__main__":
    B, Sq, Skv, H, NUM_HEADS = 2, 8, 16, 32, 4

    key = jax.random.PRNGKey(0)
    kq, kkv, k1, k2, k3, k4 = jax.random.split(key, 6)

    query = (jax.random.normal(kq, (B, Sq, H), jnp.float32) * 0.5).astype(DTYPE)
    key_value = (jax.random.normal(kkv, (B, Skv, H), jnp.float32) * 0.5).astype(DTYPE)

    # Deterministic synthetic Q/K/V/O weights, PyTorch layout (out_features, in_features).
    wq = (jax.random.normal(k1, (H, H), jnp.float32) * 0.05).astype(DTYPE)
    wk = (jax.random.normal(k2, (H, H), jnp.float32) * 0.05).astype(DTYPE)
    wv = (jax.random.normal(k3, (H, H), jnp.float32) * 0.05).astype(DTYPE)
    wo = (jax.random.normal(k4, (H, H), jnp.float32) * 0.05).astype(DTYPE)

    # Additive attention mask (broadcastable): mask out the last 4 key/value positions.
    mask = jnp.where(
        jnp.arange(Skv)[None, None, None, :] >= Skv - 4, -1e4, 0.0
    ).astype(jnp.float32)                       # (1, 1, 1, Skv)

    params = prepare_params(wq, wk, wv, wo, num_heads=NUM_HEADS)   # one-time init
    out = cross_attention_forward(params, query, key_value, mask=mask)
    out = jax.block_until_ready(out)

    ref = _reference(query, key_value, wq, wk, wv, wo,
                     jnp.broadcast_to(mask, (B, NUM_HEADS, Sq, Skv)), NUM_HEADS)

    assert out.shape == (B, Sq, H) and out.dtype == DTYPE
    err = float(jnp.max(jnp.abs(out.astype(jnp.float32) - ref)))
    assert err < 5e-2, f"max abs error too large: {err}"

    print("KERNEL_OK")
</pallas_src>

<mosaic_0001>
module attributes {stable_mosaic.version = 11 : i64} {
  func.func @_proj_q_kernel(%arg0: i32, %arg1: i32, %arg2: i32, %arg3: memref<1x16x128xbf16, #tpu.memory_space<vmem>>, %arg4: memref<1x128x128xbf16, #tpu.memory_space<vmem>>, %arg5: memref<1x1x16x128xbf16, #tpu.memory_space<vmem>>) attributes {dimension_semantics = [#tpu.dimension_semantics<parallel>, #tpu.dimension_semantics<parallel>, #tpu.dimension_semantics<parallel>], iteration_bounds = array<i64: 2, 4, 1>, scalar_prefetch = 0 : i64, scratch_operands = 0 : i64, tpu.core_type = #tpu.core_type<tc>, window_params = [{transform_indices = @transform_0, window_bounds = array<i64: 1, 16, 128>}, {transform_indices = @transform_1, window_bounds = array<i64: 1, 128, 128>}, {transform_indices = @transform_2, window_bounds = array<i64: 1, 1, 16, 128>}]} {
    %c0 = arith.constant 0 : index
    %c0_0 = arith.constant 0 : index
    %c0_1 = arith.constant 0 : index
    %0 = vector.load %arg3[%c0, %c0_0, %c0_1] : memref<1x16x128xbf16, #tpu.memory_space<vmem>>, vector<1x16x128xbf16>
    %1 = vector.shape_cast %0 : vector<1x16x128xbf16> to vector<16x128xbf16>
    %c0_2 = arith.constant 0 : index
    %c0_3 = arith.constant 0 : index
    %c0_4 = arith.constant 0 : index
    %2 = vector.load %arg4[%c0_2, %c0_3, %c0_4] : memref<1x128x128xbf16, #tpu.memory_space<vmem>>, vector<1x128x128xbf16>
    %3 = vector.shape_cast %2 : vector<1x128x128xbf16> to vector<128x128xbf16>
    %cst = arith.constant dense<0.000000e+00> : vector<16x128xf32>
    %4 = tpu.matmul %1, %3, %cst {dimension_numbers = #tpu.dot_dimension_numbers<[1], [0], [0], [1], [0, 0, 1, 1], [], []>} : vector<16x128xbf16>, vector<128x128xbf16>, vector<16x128xf32> -> vector<16x128xf32>
    %5 = arith.truncf %4 : vector<16x128xf32> to vector<16x128xbf16>
    %c0_5 = arith.constant 0 : index
    %c0_6 = arith.constant 0 : index
    %c0_7 = arith.constant 0 : index
    %c0_8 = arith.constant 0 : index
    %6 = vector.load %arg5[%c0_5, %c0_6, %c0_7, %c0_8] : memref<1x1x16x128xbf16, #tpu.memory_space<vmem>>, vector<1x1x16x128xbf16>
    %7 = vector.shape_cast %6 : vector<1x1x16x128xbf16> to vector<16x128xbf16>
    %8 = vector.shape_cast %5 : vector<16x128xbf16> to vector<1x1x16x128xbf16>
    tpu.vector_store %arg5[%c0_5, %c0_6, %c0_7, %c0_8], %8 {strides = array<i32>} : memref<1x1x16x128xbf16, #tpu.memory_space<vmem>>, vector<1x1x16x128xbf16>,
    return
  }
  func.func @transform_0(%arg0: i32, %arg1: i32, %arg2: i32) -> (i32, i32, i32) {
    %c0_i32 = arith.constant 0 : i32
    %c0_i32_0 = arith.constant 0 : i32
    return %arg0, %arg2, %c0_i32 : i32, i32, i32
  }
  func.func @transform_1(%arg0: i32, %arg1: i32, %arg2: i32) -> (i32, i32, i32) {
    %c0_i32 = arith.constant 0 : i32
    %c0_i32_0 = arith.constant 0 : i32
    %c0_i32_1 = arith.constant 0 : i32
    return %arg1, %c0_i32, %c0_i32_0 : i32, i32, i32
  }
  func.func @transform_2(%arg0: i32, %arg1: i32, %arg2: i32) -> (i32, i32, i32, i32) {
    %c0_i32 = arith.constant 0 : i32
    %c0_i32_0 = arith.constant 0 : i32
    return %arg0, %arg1, %arg2, %c0_i32 : i32, i32, i32, i32
  }
}

</mosaic_0001>

<bundles_post_ra>
// kernel: tpu_custom_call.1
= control target key start
LH: loop header
LB: loop body
LE: loop exit
PB: predicated region body
PF: predicated region fallthrough
CT: control target
= control target key end

     0   :  { %s1294_s0 = inlined_call_operand.hbm [shape: bf16[2,16,128], index: 0, kind: input, shape index: {}]   ;;  %s1295_s1 = inlined_call_operand.hbm [shape: bf16[4,128,128], index: 1, kind: input, shape index: {}]   ;;  %s1296_s2 = inlined_call_operand.hbm [shape: bf16[2,4,16,128], index: 2, kind: output, shape index: {}]  }
   0x1   :  { %1308 = sst [smem:[#allocation15_spill]] %s1294_s0 }
   0x2   :  { %7 = vsyncpa [#allocation3], 0 }
   0x3   :  { %9 = vsyncpa [#allocation3 + $0x1], 0 }
   0x4   :  { %10 = vsyncpa [#allocation6], 0 }
   0x5   :  { %12 = vsyncpa [#allocation6 + $0x1], 0 }
   0x6   :  { %13 = vsyncpa [#allocation4], 0 }
   0x7   :  { %15 = vsyncpa [#allocation4 + $0x1], 0  ;;  %s942_s9 = smov 0   ;;  %s944_s10 = smov 0  }
   0x8   :  { %s946_s11 = smov 0   ;;  %s948_s12 = smov 0  }
   0x9   :  { %s950_s13 = smov 0   ;;  %s952_s14 = smov 0  }
   0xa   :  { %s954_s15 = smov 0   ;;  %s956_s16 = smov 0  }
   0xb   :  { %s958_s17 = smov 0   ;;  %s960_s18 = smov 0  }
   0xc   :  { %s962_s19 = smov 0   ;;  %s964_s20 = smov 0  }
   0xd   :  { %s966_s21 = smov 0   ;;  %s968_s22 = smov 0  }
   0xe LB: > { %1309 = sst [smem:[#allocation11_spill]] %s908_s20  ;;  %s491_s23 = sadd.s32 4294967295, %s916_s22   ;;  %s916_s22 = sphi %s968_s22, %s21_s22   ;;  %s912_s21 = sphi %s966_s21, %s1336_s21   ;;  %s908_s20 = sphi %s964_s20, %s1335_s20   ;;  %s904_s19 = sphi %s962_s19, %s1334_s19   ;;  %s900_s18 = sphi %s960_s18, %s1333_s18   ;;  %s896_s17 = sphi %s958_s17, %s1345_s17   ;;  %s892_s16 = sphi %s956_s16, %s1344_s16   ;;  %s888_s15 = sphi %s954_s15, %s1343_s15   ;;  %s884_s14 = sphi %s952_s14, %s1342_s14   ;;  %s880_s13 = sphi %s950_s13, %s1341_s13   ;;  %s876_s12 = sphi %s948_s12, %s1340_s12   ;;  %s872_s11 = sphi %s946_s11, %s1339_s11   ;;  %s868_s10 = sphi %s944_s10, %s1338_s10   ;;  %s864_s9 = sphi %s942_s9, %s1337_s9  }
   0xf   : > { %1310 = sst [smem:[#allocation12_spill]] %s912_s21  ;;  %s40_s24 = sadd.s32 1, %s912_s21 }
  0x10   : > { %p56_p0 = scmp.ne.s32.totalorder %s896_s17, %s892_s16  ;;  %p1298_p1 = scmp.eq.s32.totalorder %s916_s22, 0 }
  0x11   : > { %p62_p2 = scmp.ne.s32.totalorder %s892_s16, %s888_s15  ;;  %p1019_p3 = scmp.eq.s32.totalorder %s491_s23, 0 }
  0x12   : > { %p58_p4 = por %p1298_p1, %p56_p0  ;;  %p1297_p6 = scmp.lt.s32.totalorder %s916_s22, 8 }
  0x13   : > { %p1027_p5 = por %p1019_p3, %p62_p2  ;;  %s142_s28 = sand.u32 1, %s896_s17  }
  0x14   : > { %s522_s29 = sshll.u32 %s912_s21, 7  ;;  %s495_s30 = sshll.u32 %s142_s28, 3 }
  0x15   : > { %s1312_s27 = scalar_select %p1027_p5, 1, 0 }
  0x16   : > { %s1313_s0 = sld [smem:[#allocation15_spill]]  ;;  %s146_s6 = scalar_lea.vmem [#allocation2], %s495_s30 }
  0x17   : > { %s155_s7 = sshll.u32 %s146_s6, 4  ;;  %p1041_p7 = pnand %p1297_p6, %p58_p4  ;;  %s1045_s7 = int_to_ptr.vmem [resolvable:$true] %s155_s7 }
  0x18   : > { %s1047_s15 = scalar_lea.sflag [#allocation3], %s142_s28 }
  0x19   : > { %p708_p9 = pneg %p1041_p7 }
  0x1c   : > { %s1037_s5 = scalar_lea.hbm %s1313_s0, %s522_s29  ;;  %s711_s4 = scalar_lea.hbm %s1313_s0, 256 }
  0x1d   : > { %s706_s3 = scalar_lea.hbm %s1037_s5, 128  ;;  %p712_p12 = scmp.lt.u32.totalorder %s1037_s5, %s1313_s0 }
  0x1e   : > { %p707_p8 = scmp.ne.s32.totalorder %s1037_s5, %s706_s3  ;;  %p713_p13 = scmp.lt.u32.totalorder %s711_s4, %s706_s3 }
  0x1f   : > { %p715_p2 = scmp.lt.u32.totalorder %s706_s3, %s1037_s5 }
  0x20   : > { %p709_p10 = pnand %p708_p9, %p707_p8  ;;  %p714_p0 = por %p713_p13, %p712_p12 }
  0x22   : > { %p710_p11 = pneg %p709_p10  ;;  %p716_p4 = por %p715_p2, %p714_p0 }
  0x24   : > { %p717_p6 = pnand %p716_p4, %p710_p11 }
  0x26   : > { %720 = shalt.err (!%p717_p6)
}
  0x27   : > { %s721_s28 = scalar_lea.vmem %s1045_s7, 128  ;;  %s918_s29 = smov [#allocation2]  }
  0x28   : > { %p722_p8 = scmp.ne.s32.totalorder %s1045_s7, %s721_s28  ;;  %s726_s30 = sshll.u32 %s918_s29, 4  ;;  %s727_s30 = int_to_ptr.vmem [resolvable:$false] %s726_s30 }
  0x29   : > { %s728_s25 = scalar_lea.vmem %s727_s30, 256  ;;  %p729_p5 = scmp.lt.s32.totalorder %s1045_s7, %s727_s30 }
  0x2a   : > { %p724_p10 = pnand %p722_p8, %p708_p9  ;;  %p730_p12 = scmp.lt.s32.totalorder %s728_s25, %s721_s28 }
  0x2c   : > { %p725_p1 = pneg %p724_p10  ;;  %p731_p13 = por %p730_p12, %p729_p5 }
  0x2e   : > { %p732_p0 = pnand %p731_p13, %p725_p1 }
  0x30   : > { %735 = shalt.err (!%p732_p0)
}
  0x31   : > { %s1300_s3 = smov 64   ;;  %s1301_s4 = smov 4  }
  0x32   : > { %569 = dma.hbm_to_vmem [thread:$0]  (!%p1041_p7), %s1037_s5, 128, %s1045_s7, %s1047_s15, %s1300_s3, %s1300_s3, %s1301_s4  }
  0x33   : > { %p501_p1 = scmp.ge.s32.totalorder %s916_s22, 1  ;;  %p184_p5 = scmp.lt.s32.totalorder %s916_s22, 9 }
  0x34   : > { %p1082_p6 = scmp.eq.s32.totalorder %s491_s23, 7  ;;  %s492_s8 = sadd.s32 4294967294, %s916_s22  }
  0x35   : > { %p1086_p9 = pnand %p501_p1, %p184_p5  ;;  %s36_s29 = sadd.s32 1, %s908_s20 }
  0x36   : > { %p38_p7 = scmp.ge.s32.totalorder %s36_s29, 4  ;;  %s75_s5 = sadd.s32 1, %s884_s14 }
  0x37   : > { %p82_p11 = scmp.ne.s32.totalorder %s884_s14, %s880_s13  ;;  %p88_p2 = scmp.ne.s32.totalorder %s880_s13, %s876_s12 }
  0x38   : > { %s1347_s29 = smov (%p38_p7, %s36_s29), 0  ;;  %s1349_s24 = smov (!%p38_p7, %s40_s24), %s912_s21 }
  0x39   : > { %1317 = sst [smem:[#allocation13_spill]] %s1347_s29  ;;  %s72_s23 = ssub.s32 %s908_s20, %s1347_s29 }
  0x3a   : > { %s105_s7 = sadd.s32 1, %s872_s11  ;;  %p42_p4 = scmp.ge.s32.totalorder %s1349_s24, 2 }
  0x3b   : > { %p73_p8 = scmp.eq.s32.totalorder %s72_s23, 0  ;;  %p1107_p10 = por %p88_p2, %p1019_p3 }
  0x3c   : > { %p115_p12 = scmp.ne.s32.totalorder %s872_s11, %s868_s10  ;;  %s1351_s24 = smov (%p42_p4, %s1349_s24), 0 }
  0x3d   : > { %s1318_s12 = scalar_select %p1107_p10, 1, 0 }
  0x3e   : > { %1319 = sst [smem:[#allocation14_spill]] %s1351_s24  ;;  %s44_s30 = ssub.s32 %s912_s21, %s1351_s24 }
  0x3f   : > { %s1116_s15 = scalar_select %p73_p8, %s884_s14, %s75_s5  }
  0x40   : > { %p1122_p13 = por %p1082_p6, %p115_p12  ;;  %p47_p0 = scmp.eq.s32.totalorder %s44_s30, 0 }
  0x41   : > { %s100_s26 = sor.u32 %s72_s23, %s44_s30  ;;  %p121_p1 = scmp.ne.s32.totalorder %s868_s10, %s864_s9 }
  0x42   : > { %s1320_s25 = scalar_select %p1122_p13, 1, 0 }
  0x43   : > { %p103_p3 = scmp.eq.s32.totalorder %s100_s26, 0  ;;  %s1321_s3 = sadd.s32 1, %s896_s17 }
  0x44   : > { %s1131_s4 = scalar_select %p47_p0, %s896_s17, %s1321_s3  }
  0x45   : > { %s1134_s0 = scalar_select %p103_p3, %s872_s11, %s105_s7  }
  0x46   : > { %p122_p5 = scmp.eq.s32.totalorder %s492_s8, 7  ;;  %s165_s29 = sand.u32 1, %s884_s14  }
  0x47   : > { %p1322_p7 = scmp.eq.s32.totalorder %s916_s22, 0  ;;  %s498_s6 = sshll.u32 %s165_s29, 6 }
  0x48   : > { %p1142_p6 = por %p122_p5, %p121_p1  ;;  %s523_s24 = sshll.u32 %s908_s20, 10 }
  0x49   : > { %p84_p2 = por %p82_p11, %p1322_p7  ;;  %s169_s21 = scalar_lea.vmem [#allocation5], %s498_s6 }
  0x4a   : > { %s1323_s5 = scalar_select %p1142_p6, 1, 0 }
  0x4b   : > { %s176_s23 = sshll.u32 %s169_s21, 4  ;;  %s1150_s3 = scalar_lea.hbm %s1295_s1, %s523_s24  ;;  %s1152_s23 = int_to_ptr.vmem [resolvable:$true] %s176_s23 }
  0x4c   : > { %p1324_p11 = scmp.lt.s32.totalorder %s916_s22, 8  ;;  %s1160_s7 = scalar_lea.sflag [#allocation6], %s165_s29 }
  0x4d   : > { %s736_s21 = scalar_lea.hbm %s1150_s3, 1024  ;;  %s741_s30 = scalar_lea.hbm %s1295_s1, 4096 }
  0x4e   : > { %p1156_p4 = pnand %p1324_p11, %p84_p2  ;;  %p737_p8 = scmp.ne.s32.totalorder %s1150_s3, %s736_s21 }
  0x4f   : > { %p742_p1 = scmp.lt.u32.totalorder %s1150_s3, %s1295_s1  ;;  %p743_p5 = scmp.lt.u32.totalorder %s741_s30, %s736_s21 }
  0x50   : > { %p738_p12 = pneg %p1156_p4  ;;  %p745_p2 = scmp.lt.u32.totalorder %s736_s21, %s1150_s3 }
  0x51   : > { %p744_p7 = por %p743_p5, %p742_p1 }
  0x52   : > { %p739_p0 = pnand %p738_p12, %p737_p8 }
  0x53   : > { %p746_p11 = por %p745_p2, %p744_p7 }
  0x54   : > { %p740_p3 = pneg %p739_p0 }
  0x56   : > { %p747_p6 = pnand %p746_p11, %p740_p3 }
  0x58   : > { %750 = shalt.err (!%p747_p6)
}
  0x59   : > { %s751_s29 = scalar_lea.vmem %s1152_s23, 1024  ;;  %s921_s24 = smov [#allocation5]  }
  0x5a   : > { %p752_p8 = scmp.ne.s32.totalorder %s1152_s23, %s751_s29  ;;  %s756_s6 = sshll.u32 %s921_s24, 4  ;;  %s757_s6 = int_to_ptr.vmem [resolvable:$false] %s756_s6 }
  0x5b   : > { %s758_s20 = scalar_lea.vmem %s757_s6, 2048  ;;  %p759_p10 = scmp.lt.s32.totalorder %s1152_s23, %s757_s6 }
  0x5c   : > { %p754_p0 = pnand %p752_p8, %p738_p12  ;;  %p760_p1 = scmp.lt.s32.totalorder %s758_s20, %s751_s29 }
  0x5e   : > { %p755_p13 = pneg %p754_p0  ;;  %p761_p5 = por %p760_p1, %p759_p10 }
  0x60   : > { %p762_p7 = pnand %p761_p5, %p755_p13 }
  0x62   : > { %765 = shalt.err (!%p762_p7)
}
  0x63   : > { %s1326_s21 = smov 4   ;;  %s1327_s30 = smov 64  }
  0x64   : > { %572 = dma.hbm_to_vmem [thread:$0]  (!%p1156_p4), %s1150_s3, 1024, %s1152_s23, %s1160_s7, %s1327_s30, %s1327_s30, %s1326_s21  }
  0x65   : > { %188 = sbr.rel (%p1086_p9) target bundleno = 377 (0x179), region = 28  ;;  %s190_s26 = sand.u32 (!%p1086_p9), 1, %s892_s16  }
  0x66   : > { %s1194_s24 = sshll.u32 (!%p1086_p9), %s190_s26, 3  ;;  %s191_s29 = scalar_lea.sflag (!%p1086_p9), [#allocation3], %s190_s26 }
  0x67   : > { %s194_s6 = scalar_lea.vmem (!%p1086_p9), [#allocation2], %s1194_s24  ;;  %p1328_p10 = scmp.ne.s32.totalorder (!%p1086_p9), %s1312_s27, 0 }
  0x6c   : > { %851 = dma.done.wait (%p1328_p10), %s191_s29, 128  }
  0x6d   : > { %853 = vsyncadd (%p1328_p10), %s191_s29, 4294967168  ;;  %s199_s8 = sand.u32 1, %s880_s13   ;;  %p1329_p9 = scmp.ne.s32.totalorder %s1318_s12, 0 }
  0x6e   : > { %s503_s23 = sshll.u32 %s199_s8, 6  ;;  %s200_s3 = scalar_lea.sflag [#allocation6], %s199_s8 }
  0x6f   : > { %s203_s28 = scalar_lea.vmem [#allocation5], %s503_s23 }
  0x70   : > { %855 = dma.done.wait (%p1329_p9), %s200_s3, 1024  }
  0x71   : > { %857 = vsyncadd (%p1329_p9), %s200_s3, 4294966272  ;;  %v922_v0 = vmov 0.0   ;;  %vm923_vm0 = vmmov 0   ;;  %v697_v1 = vld [vmem:[%s203_s28] sm:$0xff]   ;;  %v698_v2 = vld [vmem:[%s203_s28 + $0x8] sm:$0xff]   ;;  %s226_s27 = sand.u32 1, %s868_s10  }
  0x72   : > { %540 = vmatprep.subr.bf16.mxu0 %v922_v0  ;;  %556 = vmatprep.mubr.msk.bf16.mxu0 %vm923_vm0, %v922_v0  ;;  %v699_v3 = vld [vmem:[%s203_s28 + $0x10] sm:$0xff]   ;;  %v700_v4 = vld [vmem:[%s203_s28 + $0x18] sm:$0xff]   ;;  %v701_v5 = vld [vmem:[%s203_s28 + $0x20] sm:$0xff]   ;;  %s504_s12 = sshll.u32 %s226_s27, 3  ;;  %s517_s7 = sshll.u32 %s900_s18, 1 }
  0x73   : > { %541 = vmatpush3.bf16.msra.mxu0 %v697_v1  ;;  %v702_v6 = vld [vmem:[%s203_s28 + $0x28] sm:$0xff]   ;;  %v703_v7 = vld [vmem:[%s203_s28 + $0x30] sm:$0xff]   ;;  %v704_v8 = vld [vmem:[%s203_s28 + $0x38] sm:$0xff]   ;;  %s518_s20 = sshll.u32 %s904_s19, 3  ;;  %s228_s30 = scalar_lea.vmem [#allocation7], %s504_s12 }
  0x74   : > { %542 = vmatprep.subr.bf16.mxu0 %v922_v0  ;;  %v705_v9 = vld [vmem:[%s194_s6] sm:$0xff]   ;;  %s370_s21 = sadd.s32 %s518_s20, %s517_s7  ;;  %s373_s26 = sshll.u32 %s228_s30, 4  ;;  %s1211_s26 = int_to_ptr.vmem [resolvable:$true] %s373_s26 }
  0x75   : > { %s519_s29 = sshll.u32 %s370_s21, 6  ;;  %s1218_s19 = scalar_lea.sflag [#allocation4], %s226_s27 }
  0x76   : > { %s1216_s18 = scalar_lea.hbm %s1296_s2, %s519_s29  ;;  %s766_s8 = scalar_lea.vmem %s1211_s26, 128 }
  0x77   : > { %543 = vmatpush3.bf16.msra.mxu0 %v698_v2  ;;  %p767_p13 = scmp.ne.s32.totalorder %s1211_s26, %s766_s8  ;;  %p1330_p6 = scmp.ne.s32.totalorder %s1320_s25, 0 }
  0x78   : > { %544 = vmatprep.subr.bf16.mxu0 %v922_v0  ;;  %s924_s23 = smov [#allocation7]  }
  0x79   : > { %p768_p4 = pnand %p767_p13, %p1330_p6  ;;  %s770_s3 = sshll.u32 %s924_s23, 4  ;;  %s771_s3 = int_to_ptr.vmem [resolvable:$false] %s770_s3 }
  0x7a   : > { %s772_s28 = scalar_lea.vmem %s771_s3, 256  ;;  %p773_p3 = scmp.lt.s32.totalorder %s1211_s26, %s771_s3 }
  0x7b   : > { %545 = vmatpush3.bf16.msra.mxu0 %v699_v3  ;;  %p769_p12 = pneg %p768_p4  ;;  %p774_p2 = scmp.lt.s32.totalorder %s772_s28, %s766_s8 }
  0x7c   : > { %546 = vmatprep.subr.bf16.mxu0 %v922_v0 }
  0x7d   : > { %p775_p11 = por %p774_p2, %p773_p3 }
  0x7f   : > { %547 = vmatpush3.bf16.msra.mxu0 %v700_v4  ;;  %p776_p8 = pnand %p775_p11, %p769_p12 }
  0x80   : > { %548 = vmatprep.subr.bf16.mxu0 %v922_v0 }
  0x83   : > { %549 = vmatpush3.bf16.msra.mxu0 %v701_v5 }
  0x84   : > { %550 = vmatprep.subr.bf16.mxu0 %v922_v0 }
  0x87   : > { %551 = vmatpush3.bf16.msra.mxu0 %v702_v6 }
  0x88   : > { %552 = vmatprep.subr.bf16.mxu0 %v922_v0 }
  0x8b   : > { %553 = vmatpush3.bf16.msra.mxu0 %v703_v7 }
  0x8c   : > { %554 = vmatprep.subr.bf16.mxu0 %v922_v0 }
  0x8f   : > { %555 = vmatpush3.bf16.msra.mxu0 %v704_v8 }
  0x92   : > { %557 = vmatmul.mubr.bf16.vlgmr.msra.gmra.mrb[0].mxu0 %v705_v9 }
 0x165   : > { %v338_v10 = vpop.f32.mrb[0].mxu0 }
 0x166   : > { %v558_v11 = vpop.f32.mrb[1].mxu0 }
 0x167   : > { %v341_v12 = vpop.f32.mrb[2].mxu0 }
 0x168   : > { %v529_v13 = vpack.c.bf16 %v341_v12, %v338_v10  ;;  %v559_v14 = vpop.f32.mrb[3].mxu0 }
 0x16a   : > { %530 = vst [vmem:[%s228_s30] sm:$0xff] %v529_v13  }
 0x16b   : > { %779 = shalt.err (!%p776_p8)
}
 0x16c   : > { %s780_s27 = scalar_lea.hbm %s1216_s18, 128  ;;  %s784_s20 = scalar_lea.hbm %s1296_s2, 1024 }
 0x16d   : > { %p781_p0 = scmp.ne.s32.totalorder %s1216_s18, %s780_s27  ;;  %p785_p7 = scmp.lt.u32.totalorder %s1216_s18, %s1296_s2 }
 0x16e   : > { %p786_p10 = scmp.lt.u32.totalorder %s784_s20, %s780_s27  ;;  %p788_p13 = scmp.lt.u32.totalorder %s780_s27, %s1216_s18 }
 0x16f   : > { %p782_p1 = pnand %p781_p0, %p1330_p6 }
 0x170   : > { %p787_p9 = por %p786_p10, %p785_p7 }
 0x171   : > { %p783_p5 = pneg %p782_p1 }
 0x172   : > { %p789_p4 = por %p788_p13, %p787_p9 }
 0x174   : > { %p790_p12 = pnand %p789_p4, %p783_p5 }
 0x176   : > { %793 = shalt.err (!%p790_p12)
}
 0x177   : > { %s925_s29 = smov 64   ;;  %s926_s24 = smov 4  }
 0x178   : > { %564 = dma.vmem_to_hbm [thread:$0]  (%p1330_p6), %s1211_s26, 128, %s1216_s18, %s1218_s19, %s925_s29, %s925_s29, %s926_s24  }
 0x179 PF: > { %p578_p3 = scmp.ge.s32.totalorder %s916_s22, 2  ;;  %s388_s6 = sand.u32 1, %s864_s9  }
 0x17a   : > { %p1331_p2 = scmp.ne.s32.totalorder %s1323_s5, 0  ;;  %s389_s8 = scalar_lea.sflag [#allocation4], %s388_s6 }
 0x17c   : > { %p574_p11 = pnand %p578_p3, %p1331_p2 }
 0x17e   : > { %859 = dma.done.wait (!%p574_p11), %s389_s8, 128  }
 0x17f   : > { %861 = vsyncadd (!%p574_p11), %s389_s8, 4294967168  ;;  %s21_s22 = sadd.s32 1, %s916_s22   ;;  %s1333_s18 = sld [smem:[#allocation11_spill]] }
 0x180   : > { %p1247_p8 = scmp.ge.s32.totalorder %s21_s22, 10   ;;  %s1334_s19 = sld [smem:[#allocation12_spill]] }
 0x181   : > { %s1335_s20 = sld [smem:[#allocation13_spill]]  ;;  %s1336_s21 = sld [smem:[#allocation14_spill]] }
 0x182   : > { %s1337_s9 = smov %s868_s10  ;;  %s1338_s10 = smov %s872_s11 }
 0x183   : > { %s1339_s11 = smov %s1134_s0  ;;  %s1340_s12 = smov %s880_s13 }
 0x184   : > { %s1341_s13 = smov %s884_s14  ;;  %s1342_s14 = smov %s1116_s15 }
 0x185   : > { %s1343_s15 = smov %s892_s16  ;;  %s1344_s16 = smov %s896_s17 }
 0x186   : > { %s1345_s17 = smov %s1131_s4  ;;  %20 = sbr.rel (!%p1247_p8) target bundleno = 14 (0xe), region = 86 }
 0x18d   :  { %394 = vsyncpa [#allocation3], 1 }
 0x18e   :  { %396 = vsyncpa [#allocation3 + $0x1], 1 }
 0x18f   :  { %397 = vsyncpa [#allocation6], 1 }
 0x190   :  { %399 = vsyncpa [#allocation6 + $0x1], 1 }
 0x191   :  { %400 = vsyncpa [#allocation4], 1 }
 0x192   :  { %402 = vsyncpa [#allocation4 + $0x1], 1 }

</bundles_post_ra>
